<compile_context>
chip_gen: v7x
topology: tpu7x:2x2x1
jax: 0.10.0
libtpu: 0.0.40
codegen_flags: <defaults>
</compile_context>

<pallas_src>
import jax
import jax.numpy as jnp
from jax.experimental import pallas as pl
from jax.experimental.pallas import tpu as pltpu

NUM_INPUTS = 28 * 28     # 784
NUM_OUTPUTS = 10
N_PAD = 128              # lane-dense output width (multiple of 128 -> unmasked vst)
TB_MAX = 2048            # bf16 batch tile; ~8 MiB worst-case live VMEM (v5e-safe)


def _round_up(n, m):
    return ((n + m - 1) // m) * m


def linear_kernel(x_ref, wt_ref, b_ref, o_ref):
    # x_ref: (TB, 784) bf16   wt_ref: (784, 128) bf16
    # b_ref: (1, 128) f32     o_ref: (TB, 128) bf16
    acc = jnp.dot(x_ref[...], wt_ref[...], preferred_element_type=jnp.float32)
    o_ref[...] = (acc + b_ref[...]).astype(o_ref.dtype)


def prepare_params(weight, bias):
    """One-time param prep (hoisted out of the per-call path).

    weight: (10, 784) f32, bias: (10,) f32
      -> wt_pad (784, 128) bf16, b_pad (1, 128) f32.
    """
    wt = weight.T.astype(jnp.bfloat16)                           # (784, 10)
    wt_pad = jnp.pad(wt, ((0, 0), (0, N_PAD - NUM_OUTPUTS)))     # (784, 128)
    b_pad = jnp.pad(bias.astype(jnp.float32), (0, N_PAD - NUM_OUTPUTS))
    return wt_pad, b_pad.reshape(1, N_PAD)


def linear_net_forward(x, wt_pad, b_pad):
    """x: (B, C, H, W) with C*H*W == 784. Returns (B, 10) float32."""
    B = x.shape[0]
    # bf16 activations: halves the dominant HBM read.  The cast/reshape/pad
    # are fused into the pallas_call input via allow_input_fusion below, so
    # no second full copy of x is materialized in HBM.
    x_flat = x.reshape(B, -1).astype(jnp.bfloat16)               # (B, 784)

    # Balanced batch tiling: pick TB so padding waste is at most a few sublane
    # groups, instead of rounding B up to the next multiple of TB_MAX.
    num_tiles = pl.cdiv(B, TB_MAX)
    TB = _round_up(pl.cdiv(B, num_tiles), 8)
    B_pad = TB * num_tiles
    if B_pad != B:
        x_flat = jnp.pad(x_flat, ((0, B_pad - B), (0, 0)))
    grid = (num_tiles,)

    cost = pl.CostEstimate(
        flops=2 * B_pad * NUM_INPUTS * N_PAD,
        transcendentals=0,
        bytes_accessed=(B_pad * NUM_INPUTS * 2       # x read (bf16)
                        + NUM_INPUTS * N_PAD * 2     # weight read (bf16)
                        + N_PAD * 4                  # bias read (f32)
                        + B_pad * N_PAD * 2),        # y write (bf16)
    )

    out_pad = pl.pallas_call(
        linear_kernel,
        out_shape=jax.ShapeDtypeStruct((B_pad, N_PAD), jnp.bfloat16),
        grid=grid,
        in_specs=[
            pl.BlockSpec((TB, NUM_INPUTS), lambda i: (i, 0)),      # streamed x tiles
            # TODO(synk): pipeline_mode=pl.Buffered(1) on weight/bias (constant
            # index_map) would save ~0.2 MiB of needless double-buffering.
            pl.BlockSpec((NUM_INPUTS, N_PAD), lambda i: (0, 0)),   # resident weight
            pl.BlockSpec((1, N_PAD), lambda i: (0, 0)),            # resident bias
        ],
        out_specs=pl.BlockSpec((TB, N_PAD), lambda i: (i, 0)),     # lane-dense stores
        compiler_params=pltpu.CompilerParams(
            # Batch tiles are independent -> megacore sharding on v7x (2 TCs),
            # neutral on single-TC v5e/v6e.
            dimension_semantics=("parallel",),
            # Let XLA fuse the reshape/cast/pad producer of x into the input
            # DMA instead of materializing an extra full pass over x in HBM.
            allow_input_fusion=[0],
        ),
        cost_estimate=cost,
    )(x_flat, wt_pad, b_pad)

    # Tiny slice + up-cast outside the kernel (cheap relative to x traffic).
    return out_pad[:B, :NUM_OUTPUTS].astype(jnp.float32)


def init_params(key):
    # Deterministic init matching nn.Linear default (uniform +/- 1/sqrt(fan_in)).
    k_w, k_b = jax.random.split(key)
    bound = 1.0 / jnp.sqrt(jnp.float32(NUM_INPUTS))
    weight = jax.random.uniform(
        k_w, (NUM_OUTPUTS, NUM_INPUTS), jnp.float32, -bound, bound)
    bias = jax.random.uniform(
        k_b, (NUM_OUTPUTS,), jnp.float32, -bound, bound)
    return weight, bias


if __name__ == "__main__":
    key = jax.random.PRNGKey(0)
    k_x, k_p = jax.random.split(key)

    B = 2
    x = jax.random.normal(k_x, (B, 1, 28, 28), jnp.float32)  # NCHW, like MNIST
    weight, bias = init_params(k_p)

    wt_pad, b_pad = prepare_params(weight, bias)   # one-time param prep
    y = linear_net_forward(x, wt_pad, b_pad)
    y = jax.block_until_ready(y)

    # Sanity check against plain-JAX f32 reference.  Tolerance is loosened vs
    # the pure-f32 kernel because the K=784 reduction now runs with bf16
    # inputs (f32 accumulation) and a bf16 output store.
    ref = x.reshape(B, -1) @ weight.T + bias
    assert y.shape == (B, NUM_OUTPUTS)
    assert y.dtype == jnp.float32
    assert jnp.allclose(y, ref, atol=3e-2, rtol=3e-2)

    print("KERNEL_OK")
</pallas_src>

<mosaic_0001>
module attributes {stable_mosaic.version = 11 : i64} {
  func.func @linear_kernel(%arg0: i32, %arg1: memref<8x784xbf16, #tpu.memory_space<vmem>>, %arg2: memref<784x128xbf16, #tpu.memory_space<vmem>>, %arg3: memref<1x128xf32, #tpu.memory_space<vmem>>, %arg4: memref<8x128xbf16, #tpu.memory_space<vmem>>) attributes {dimension_semantics = [#tpu.dimension_semantics<parallel>], iteration_bounds = array<i64: 1>, scalar_prefetch = 0 : i64, scratch_operands = 0 : i64, tpu.core_type = #tpu.core_type<tc>, window_params = [{transform_indices = @transform_0, window_bounds = array<i64: 8, 784>}, {pipeline_mode = #tpu.pipeline_mode<synchronous>, transform_indices = @transform_1, window_bounds = array<i64: 784, 128>}, {pipeline_mode = #tpu.pipeline_mode<synchronous>, transform_indices = @transform_2, window_bounds = array<i64: 1, 128>}, {transform_indices = @transform_3, window_bounds = array<i64: 8, 128>}]} {
    %c0 = arith.constant 0 : index
    %c0_0 = arith.constant 0 : index
    %0 = vector.load %arg1[%c0, %c0_0] : memref<8x784xbf16, #tpu.memory_space<vmem>>, vector<8x784xbf16>
    %c0_1 = arith.constant 0 : index
    %c0_2 = arith.constant 0 : index
    %1 = vector.load %arg2[%c0_1, %c0_2] : memref<784x128xbf16, #tpu.memory_space<vmem>>, vector<784x128xbf16>
    %cst = arith.constant dense<0.000000e+00> : vector<8x128xf32>
    %2 = tpu.matmul %0, %1, %cst {dimension_numbers = #tpu.dot_dimension_numbers<[1], [0], [0], [1], [0, 0, 1, 1], [], []>} : vector<8x784xbf16>, vector<784x128xbf16>, vector<8x128xf32> -> vector<8x128xf32>
    %c0_3 = arith.constant 0 : index
    %c0_4 = arith.constant 0 : index
    %3 = vector.load %arg3[%c0_3, %c0_4] : memref<1x128xf32, #tpu.memory_space<vmem>>, vector<1x128xf32>
    %4 = vector.broadcast %3 : vector<1x128xf32> to vector<8x128xf32>
    %5 = arith.addf %2, %4 : vector<8x128xf32>
    %6 = arith.truncf %5 : vector<8x128xf32> to vector<8x128xbf16>
    %c0_5 = arith.constant 0 : index
    %c0_6 = arith.constant 0 : index
    %7 = vector.load %arg4[%c0_5, %c0_6] : memref<8x128xbf16, #tpu.memory_space<vmem>>, vector<8x128xbf16>
    tpu.vector_store %arg4[%c0_5, %c0_6], %6 {strides = array<i32>} : memref<8x128xbf16, #tpu.memory_space<vmem>>, vector<8x128xbf16>,
    return
  }
  func.func @transform_0(%arg0: i32) -> (i32, i32) {
    %c0_i32 = arith.constant 0 : i32
    %c0_i32_0 = arith.constant 0 : i32
    return %arg0, %c0_i32 : i32, i32
  }
  func.func @transform_1(%arg0: i32) -> (i32, i32) {
    %c0_i32 = arith.constant 0 : i32
    %c0_i32_0 = arith.constant 0 : i32
    %c0_i32_1 = arith.constant 0 : i32
    return %c0_i32, %c0_i32_0 : i32, i32
  }
  func.func @transform_2(%arg0: i32) -> (i32, i32) {
    %c0_i32 = arith.constant 0 : i32
    %c0_i32_0 = arith.constant 0 : i32
    %c0_i32_1 = arith.constant 0 : i32
    return %c0_i32, %c0_i32_0 : i32, i32
  }
  func.func @transform_3(%arg0: i32) -> (i32, i32) {
    %c0_i32 = arith.constant 0 : i32
    %c0_i32_0 = arith.constant 0 : i32
    return %arg0, %c0_i32 : i32, i32
  }
}

</mosaic_0001>

<bundles_post_ra>
// kernel: tpu_custom_call.1
= control target key start
LH: loop header
LB: loop body
LE: loop exit
PB: predicated region body
PF: predicated region fallthrough
CT: control target
= control target key end

     0   :  { %8 = vsyncpa [#allocation3], 0  ;;  %s991_s0 = inlined_call_operand.hbm [shape: bf16[8,784], index: 0, kind: input, shape index: {}]   ;;  %s992_s1 = inlined_call_operand.hbm [shape: bf16[784,128], index: 1, kind: input, shape index: {}]   ;;  %s993_s2 = inlined_call_operand.vmem [shape: f32[1,128], index: 2, kind: input, shape index: {}]   ;;  %s994_s3 = inlined_call_operand.hbm [shape: bf16[8,128], index: 3, kind: output, shape index: {}]  }
   0x1   :  { %9 = vsyncpa [#allocation6], 0 }
   0x2   :  { %10 = vsyncpa [#allocation4], 0  ;;  %s918_s12 = smov [#allocation2]   ;;  %s919_s14 = smov [#allocation5]  }
   0x3   :  { %s17_s13 = sshll.u32 %s918_s12, 4  ;;  %s26_s15 = sshll.u32 %s919_s14, 4  ;;  %s18_s13 = int_to_ptr.vmem [resolvable:$true] %s17_s13  ;;  %s945_s15 = int_to_ptr.vmem [resolvable:$true] %s26_s15 }
   0x4   :  { %s846_s18 = scalar_lea.hbm %s991_s0, 448 }
   0x5   :  { %p847_p0 = scmp.ne.s32.totalorder %s991_s0, %s846_s18  ;;  %p850_p1 = scmp.lt.u32.totalorder %s846_s18, %s991_s0 }
   0x7   :  { %p852_p2 = pnand %p850_p1, %p847_p0 }
   0x9   :  { %855 = shalt.err (!%p852_p2)
}
   0xa   :  { %s856_s23 = scalar_lea.vmem %s18_s13, 448  ;;  %p861_p4 = scmp.lt.s32.totalorder %s18_s13, %s18_s13 }
   0xb   :  { %p857_p3 = scmp.ne.s32.totalorder %s18_s13, %s856_s23  ;;  %p862_p5 = scmp.lt.s32.totalorder %s856_s23, %s856_s23 }
   0xd   :  { %p863_p6 = por %p862_p5, %p861_p4 }
   0xf   :  { %p864_p7 = pnand %p863_p6, %p857_p3 }
  0x11   :  { %867 = shalt.err (!%p864_p7)
}
  0x12   :  { %20 = dma.hbm_to_vmem [thread:$0]  %s991_s0, 448, %s18_s13, [#allocation3]  }
  0x13   :  { %s868_s28 = scalar_lea.hbm %s992_s1, 6272 }
  0x14   :  { %p869_p8 = scmp.ne.s32.totalorder %s992_s1, %s868_s28  ;;  %p872_p9 = scmp.lt.u32.totalorder %s868_s28, %s992_s1 }
  0x16   :  { %p874_p10 = pnand %p872_p9, %p869_p8 }
  0x18   :  { %877 = shalt.err (!%p874_p10)
}
  0x19   :  { %s878_s6 = scalar_lea.vmem %s945_s15, 6272  ;;  %p883_p12 = scmp.lt.s32.totalorder %s945_s15, %s945_s15 }
  0x1a   :  { %p879_p11 = scmp.ne.s32.totalorder %s945_s15, %s878_s6  ;;  %p884_p13 = scmp.lt.s32.totalorder %s878_s6, %s878_s6 }
  0x1c   :  { %p885_p0 = por %p884_p13, %p883_p12 }
  0x1e   :  { %p886_p1 = pnand %p885_p0, %p879_p11 }
  0x20   :  { %889 = shalt.err (!%p886_p1)
}
  0x21   :  { %s920_s0 = smov 64   ;;  %s921_s7 = smov 4  }
  0x22   :  { %32 = dma.hbm_to_vmem [thread:$0]  %s992_s1, 6272, %s945_s15, [#allocation6], %s920_s0, %s920_s0, %s921_s7  }
  0x23   :  { %912 = dma.done.wait [#allocation3], 448  }
  0x24   :  { %913 = vsyncadd [#allocation3], 4294966848 }
  0x25   :  { %914 = dma.done.wait [#allocation6], 6272  }
  0x26   :  { %915 = vsyncadd [#allocation6], 4294961024  ;;  %v790_v0 = vld [vmem:[#allocation5 + $0x40] sm:$0xff]   ;;  %v794_v4 = vld [vmem:[#allocation5 + $0x48] sm:$0xff]   ;;  %v922_v43 = vmov 0.0   ;;  %vm923_vm0 = vmmov 0  }
  0x27   :  { %v791_v1 = vld [vmem:[#allocation5] sm:$0xff]   ;;  %709 = vmatprep.subr.bf16.mxu0 %v790_v0  ;;  %v795_v5 = vld [vmem:[#allocation5 + $0x8] sm:$0xff]   ;;  %v798_v8 = vld [vmem:[#allocation5 + $0x50] sm:$0xff]   ;;  %vm469_vm1 = vcmask 130048  }
  0x28   :  { %v792_v2 = vld [vmem:[#allocation5 + $0xc0] sm:$0xff]   ;;  %710 = vmatpush3.bf16.msra.mxu0 %v791_v1  ;;  %v796_v6 = vld [vmem:[#allocation5 + $0xc8] sm:$0xff]   ;;  %v799_v9 = vld [vmem:[#allocation5 + $0x10] sm:$0xff]  }
  0x29   :  { %v793_v3 = vld [vmem:[#allocation5 + $0x80] sm:$0xff]   ;;  %731 = vmatprep.subr.bf16.mxu1 %v792_v2  ;;  %711 = vmatprep.subr.bf16.mxu0 %v794_v4  ;;  %v797_v7 = vld [vmem:[#allocation5 + $0x88] sm:$0xff]   ;;  %v800_v10 = vld [vmem:[#allocation5 + $0xd0] sm:$0xff]  }
  0x2a   :  { %732 = vmatpush3.bf16.msra.mxu1 %v793_v3  ;;  %v801_v11 = vld [vmem:[#allocation5 + $0x90] sm:$0xff]   ;;  %v802_v12 = vld [vmem:[#allocation5 + $0x58] sm:$0xff]   ;;  %v806_v16 = vld [vmem:[#allocation5 + $0x60] sm:$0xff]  }
  0x2b   :  { %733 = vmatprep.subr.bf16.mxu1 %v796_v6  ;;  %v803_v13 = vld [vmem:[#allocation5 + $0x18] sm:$0xff]   ;;  %v807_v17 = vld [vmem:[#allocation5 + $0x20] sm:$0xff]   ;;  %v810_v20 = vld [vmem:[#allocation5 + $0x68] sm:$0xff]  }
  0x2c   :  { %712 = vmatpush3.bf16.msra.mxu0 %v795_v5  ;;  %v804_v14 = vld [vmem:[#allocation5 + $0xd8] sm:$0xff]   ;;  %v808_v18 = vld [vmem:[#allocation5 + $0xe0] sm:$0xff]   ;;  %v811_v21 = vld [vmem:[#allocation5 + $0x28] sm:$0xff]  }
  0x2d   :  { %713 = vmatprep.subr.bf16.mxu0 %v798_v8  ;;  %v805_v15 = vld [vmem:[#allocation5 + $0x98] sm:$0xff]   ;;  %v809_v19 = vld [vmem:[#allocation5 + $0xa0] sm:$0xff]   ;;  %v812_v22 = vld [vmem:[#allocation5 + $0xe8] sm:$0xff]  }
  0x2e   :  { %734 = vmatpush3.bf16.msra.mxu1 %v797_v7  ;;  %v813_v23 = vld [vmem:[#allocation5 + $0xa8] sm:$0xff]   ;;  %v814_v24 = vld [vmem:[#allocation5 + $0x70] sm:$0xff]   ;;  %v818_v28 = vld [vmem:[#allocation5 + $0x78] sm:$0xff]  }
  0x2f   :  { %735 = vmatprep.subr.bf16.mxu1 %v800_v10  ;;  %v815_v25 = vld [vmem:[#allocation5 + $0x30] sm:$0xff]   ;;  %v819_v29 = vld [vmem:[#allocation5 + $0x38] sm:$0xff]   ;;  %v42_v31 = vld [vmem:[#allocation2] sm:$0xff] }
  0x30   :  { %714 = vmatpush3.bf16.msra.mxu0 %v799_v9  ;;  %v816_v26 = vld [vmem:[#allocation5 + $0xf0] sm:$0xff]   ;;  %v820_v30 = vld [vmem:[#allocation5 + $0xf8] sm:$0xff]   ;;  %v652_v32 = vcombine.low %v42_v31, %v42_v31  ;;  %v653_v33 = vcombine.high %v42_v31, %v42_v31  ;;  %v824_v35 = vld [vmem:[#allocation5 + $0x140] sm:$0xff]  }
  0x31   :  { %715 = vmatprep.subr.bf16.mxu0 %v802_v12  ;;  %v817_v27 = vld [vmem:[#allocation5 + $0xb0] sm:$0xff]   ;;  %v823_v34 = vld [vmem:[#allocation5 + $0xb8] sm:$0xff]   ;;  %v827_v39 = vld [vmem:[#allocation5 + $0x100] sm:$0xff]  }
  0x32   :  { %736 = vmatpush3.bf16.msra.mxu1 %v801_v11  ;;  %v43_v36 = vld [vmem:[#allocation2 + $0x8] sm:$0xff]  ;;  %505 = vmatprep.mubr.bf16.mxu0 %v653_v33  ;;  %v832_v45 = vld [vmem:[#allocation5 + $0x158] sm:$0xff]   ;;  %v834_v47 = vld [vmem:[#allocation5 + $0x160] sm:$0xff]  }
  0x33   :  { %737 = vmatprep.subr.bf16.mxu1 %v804_v14  ;;  %v654_v37 = vcombine.low %v43_v36, %v43_v36  ;;  %v655_v38 = vcombine.high %v43_v36, %v43_v36  ;;  %v828_v40 = vld [vmem:[#allocation5 + $0x148] sm:$0xff]   ;;  %v830_v42 = vld [vmem:[#allocation5 + $0x150] sm:$0xff]   ;;  %v833_v46 = vld [vmem:[#allocation5 + $0x118] sm:$0xff]  }
  0x34   :  { %716 = vmatpush3.bf16.msra.mxu0 %v803_v13  ;;  %v829_v41 = vld [vmem:[#allocation5 + $0x108] sm:$0xff]   ;;  %v831_v44 = vld [vmem:[#allocation5 + $0x110] sm:$0xff]   ;;  %v835_v48 = vld [vmem:[#allocation5 + $0x120] sm:$0xff]  }
  0x35   :  { %717 = vmatprep.subr.bf16.mxu0 %v806_v16  ;;  %545 = vmatprep.mubr.bf16.mxu1 %v655_v38  ;;  %v836_v49 = vld [vmem:[#allocation5 + $0x168] sm:$0xff]   ;;  %v842_v50 = vld [vmem:[#allocation5 + $0x180] sm:$0xff]   ;;  %v44_v51 = vld [vmem:[#allocation2 + $0x10] sm:$0xff] }
  0x36   :  { %738 = vmatpush3.bf16.msra.mxu1 %v805_v15  ;;  %v657_v52 = vcombine.high %v44_v51, %v44_v51  ;;  %v845_v53 = vld [vmem:[#allocation2 + $0x18] ss:$0 sps:$4 sm:$0xff]   ;;  %v837_v54 = vld [vmem:[#allocation5 + $0x128] sm:$0xff]   ;;  %v838_v55 = vld [vmem:[#allocation5 + $0x170] sm:$0xff]   ;;  %v656_v59 = vcombine.low %v44_v51, %v44_v51 }
  0x37   :  { %739 = vmatprep.subr.bf16.mxu1 %v808_v18  ;;  %v839_v56 = vld [vmem:[#allocation5 + $0x130] sm:$0xff]   ;;  %v840_v57 = vld [vmem:[#allocation5 + $0x178] sm:$0xff]   ;;  %v651_v61 = vld [vmem:[%s993_s2] ss:$0 sm:$0xff]  ;;  %s924_s2 = smov [#allocation7]  }
  0x38   :  { %718 = vmatpush3.bf16.msra.mxu0 %v807_v17  ;;  %v841_v58 = vld [vmem:[#allocation5 + $0x138] sm:$0xff]   ;;  %s641_s11 = sshll.u32 %s924_s2, 4  ;;  %s642_s11 = int_to_ptr.vmem [resolvable:$true] %s641_s11 }
  0x39   :  { %719 = vmatprep.subr.bf16.mxu0 %v810_v20  ;;  %s890_s12 = scalar_lea.vmem %s642_s11, 64  ;;  %p895_p3 = scmp.lt.s32.totalorder %s642_s11, %s642_s11 }
  0x3a   :  { %740 = vmatpush3.bf16.msra.mxu1 %v809_v19  ;;  %p891_p2 = scmp.ne.s32.totalorder %s642_s11, %s890_s12  ;;  %p896_p4 = scmp.lt.s32.totalorder %s890_s12, %s890_s12 }
  0x3b   :  { %741 = vmatprep.subr.bf16.mxu1 %v812_v22 }
  0x3c   :  { %720 = vmatpush3.bf16.msra.mxu0 %v811_v21  ;;  %p897_p5 = por %p896_p4, %p895_p3 }
  0x3d   :  { %721 = vmatprep.subr.bf16.mxu0 %v814_v24 }
  0x3e   :  { %742 = vmatpush3.bf16.msra.mxu1 %v813_v23  ;;  %p898_p6 = pnand %p897_p5, %p891_p2 }
  0x3f   :  { %743 = vmatprep.subr.bf16.mxu1 %v816_v26 }
  0x40   :  { %722 = vmatpush3.bf16.msra.mxu0 %v815_v25 }
  0x41   :  { %723 = vmatprep.subr.bf16.mxu0 %v818_v28 }
  0x42   :  { %744 = vmatpush3.bf16.msra.mxu1 %v817_v27 }
  0x43   :  { %745 = vmatprep.subr.bf16.mxu1 %v820_v30 }
  0x44   :  { %724 = vmatpush3.bf16.msra.mxu0 %v819_v29 }
  0x45   :  { %753 = vmatprep.subr.bf16.mxu0 %v824_v35 }
  0x46   :  { %746 = vmatpush3.bf16.msra.mxu1 %v823_v34 }
  0x47   :  { %506 = vmatmul.mubr.bf16.vlgmr.msra.gmra.mrb[0].mxu0 %v652_v32  ;;  %777 = vmatprep.subr.bf16.mxu1 %v922_v43 }
  0x48   :  { %754 = vmatpush3.bf16.msra.mxu0 %v827_v39  ;;  %585 = vmatprep.mubr.bf16.mxu0 %v657_v52 }
  0x49   :  { %546 = vmatmul.mubr.bf16.vlgmr.msra.gmra.mrb[0].mxu1 %v654_v37  ;;  %755 = vmatprep.subr.bf16.mxu0 %v828_v40 }
  0x4a   :  { %779 = vmatprep.mubr.msk.bf16.mxu1 %vm923_vm0, %v922_v43  ;;  %778 = vmatpush3.bf16.msra.mxu1 %v842_v50 }
  0x4c   :  { %756 = vmatpush3.bf16.msra.mxu0 %v829_v41 }
  0x4d   :  { %757 = vmatprep.subr.bf16.mxu0 %v830_v42 }
  0x50   :  { %758 = vmatpush3.bf16.msra.mxu0 %v831_v44 }
  0x51   :  { %759 = vmatprep.subr.bf16.mxu0 %v832_v45  ;;  %780 = vmatmul.mubr.msk.bf16.vlgmr.msra.gmra.mrb[4].mxu1 %vm469_vm1, %v845_v53 }
  0x54   :  { %760 = vmatpush3.bf16.msra.mxu0 %v833_v46 }
  0x55   :  { %761 = vmatprep.subr.bf16.mxu0 %v834_v47 }
  0x58   :  { %762 = vmatpush3.bf16.msra.mxu0 %v835_v48 }
  0x59   :  { %763 = vmatprep.subr.bf16.mxu0 %v836_v49 }
  0x5c   :  { %764 = vmatpush3.bf16.msra.mxu0 %v837_v54 }
  0x5d   :  { %765 = vmatprep.subr.bf16.mxu0 %v838_v55 }
  0x60   :  { %766 = vmatpush3.bf16.msra.mxu0 %v839_v56 }
  0x61   :  { %767 = vmatprep.subr.bf16.mxu0 %v840_v57 }
  0x64   :  { %768 = vmatpush3.bf16.msra.mxu0 %v841_v58 }
  0x67   :  { %586 = vmatmul.mubr.bf16.vlgmr.msra.gmra.mrb[4].mxu0 %v656_v59 }
 0x11a   :  { %v725_v60 = vpop.f32.mrb[0].mxu0 }
 0x11b   :  { %v726_v62 = vpop.f32.mrb[1].mxu0 }
 0x11c   :  { %v727_v63 = vadd.f32 %v726_v62, %v725_v60  ;;  %v728_v0 = vpop.f32.mrb[2].mxu0  ;;  %v747_v1 = vpop.f32.mrb[0].mxu1 }
 0x11d   :  { %v729_v2 = vpop.f32.mrb[3].mxu0  ;;  %v748_v3 = vpop.f32.mrb[1].mxu1 }
 0x11e   :  { %v508_v4 = vadd.f32 %v727_v63, %v651_v61  ;;  %v749_v5 = vadd.f32 %v748_v3, %v747_v1  ;;  %v750_v6 = vpop.f32.mrb[2].mxu1 }
 0x11f   :  { %v751_v7 = vpop.f32.mrb[3].mxu1 }
 0x120   :  { %v548_v8 = vadd.f32 %v749_v5, %v508_v4 }
 0x124   :  { %v627_v9 = vpop.f32.mrb[4].mxu1 }
 0x125   :  { %v781_v10 = vpop.f32.mrb[5].mxu1 }
 0x126   :  { %v630_v11 = vpop.f32.mrb[6].mxu1 }
 0x127   :  { %v782_v12 = vpop.f32.mrb[7].mxu1 }
 0x13a   :  { %v769_v13 = vpop.f32.mrb[4].mxu0 }
 0x13b   :  { %v770_v14 = vpop.f32.mrb[5].mxu0 }
 0x13c   :  { %v771_v15 = vadd.f32 %v770_v14, %v769_v13  ;;  %v772_v16 = vpop.f32.mrb[6].mxu0 }
 0x13d   :  { %v773_v17 = vpop.f32.mrb[7].mxu0 }
 0x13e   :  { %v588_v18 = vadd.f32 %v771_v15, %v548_v8 }
 0x140   :  { %v628_v19 = vadd.f32 %v627_v9, %v588_v18 }
 0x142   :  { %v633_v20 = vpack.c.bf16 %v628_v19, %v628_v19 }
 0x144   :  { %634 = vst [vmem:[#allocation7] sm:$0xf] %v633_v20 }
 0x145   :  { %901 = shalt.err (!%p898_p6)
}
 0x146   :  { %s902_s15 = scalar_lea.hbm %s994_s3, 64 }
 0x147   :  { %p903_p7 = scmp.ne.s32.totalorder %s994_s3, %s902_s15  ;;  %p906_p8 = scmp.lt.u32.totalorder %s902_s15, %s994_s3 }
 0x149   :  { %p908_p9 = pnand %p906_p8, %p903_p7 }
 0x14b   :  { %911 = shalt.err (!%p908_p9)
}
 0x14c   :  { %644 = dma.vmem_to_hbm [thread:$0]  %s642_s11, 64, %s994_s3, [#allocation4]  }
 0x14d   :  { %916 = dma.done.wait [#allocation4], 64  }
 0x14e   :  { %917 = vsyncadd [#allocation4], 4294967232 }
 0x14f   :  { %648 = vsyncpa [#allocation3], 1 }
 0x150   :  { %649 = vsyncpa [#allocation6], 1 }
 0x151   :  { %650 = vsyncpa [#allocation4], 1 }

</bundles_post_ra>
